<compile_context>
chip_gen: v7x
topology: tpu7x:2x2x1
jax: 0.10.0
libtpu: 0.0.40
codegen_flags: <defaults>
</compile_context>

<pallas_src>
import functools

import jax
import jax.numpy as jnp
from jax.experimental import pallas as pl
from jax.experimental.pallas import tpu as pltpu

_MIB = 1024 * 1024


def _round_up(v, m):
    return ((v + m - 1) // m) * m


def _ls_ce_kernel(x_ref, tgt_ref, out_ref, *, smoothing, n_rows, num_classes,
                  block_rows):
    """One row-block of the label-smoothing CE loss.

    x_ref:   (TM, C)  logits block (input dtype), VMEM
    tgt_ref: (TM, 1)  int32 class indices block, VMEM
    out_ref: (1, 1, 128) f32 partial loss-sum for this block (lane-dense), VMEM
    """
    confidence = 1.0 - smoothing

    x = x_ref[...].astype(jnp.float32)                       # upcast per block
    m = jnp.max(x, axis=-1, keepdims=True)                   # (TM, 1)
    shifted = x - m                                          # (TM, C)
    lse = jnp.log(jnp.sum(jnp.exp(shifted), axis=-1, keepdims=True))  # (TM, 1)

    # Split weighted reduction (weights sum to 1):
    #   weighted = (s/C) * sum_j shifted_ij + conf * shifted_i,t_i
    tgt = tgt_ref[...]                                       # (TM, 1) int32
    col = jax.lax.broadcasted_iota(jnp.int32, (1, num_classes), 1)   # (1, C)
    onehot = col == tgt                                      # (TM, C) bool
    sum_x = jnp.sum(shifted, axis=-1, keepdims=True)         # (TM, 1)
    gather = jnp.sum(jnp.where(onehot, shifted, 0.0), axis=-1,
                     keepdims=True)                          # (TM, 1)
    weighted = (smoothing / num_classes) * sum_x + confidence * gather

    row_loss = lse - weighted                                # (TM, 1)

    # Mask rows that belong to edge-block padding (use the true N). Keep this
    # immediately before the cross-row reduction.
    row_idx = pl.program_id(0) * block_rows + jax.lax.broadcasted_iota(
        jnp.int32, row_loss.shape, 0)
    row_loss = jnp.where(row_idx < n_rows, row_loss, 0.0)

    partial = jnp.sum(row_loss)                              # scalar
    out_ref[...] = jnp.full(out_ref.shape, partial, jnp.float32)


def _vmem_budgets(vmem_block_budget_bytes):
    """Generation-aware block budget / vmem cap (v5e/v6e: 128 MiB, v7x: 64)."""
    try:
        info = pltpu.get_tpu_info()
        phys_vmem = int(getattr(info, "vmem_capacity_bytes", 64 * _MIB))
    except Exception:  # CPU interpret mode / query unavailable: be conservative.
        phys_vmem = 64 * _MIB
    if phys_vmem >= 96 * _MIB:       # v5e / v6e: 128 MiB physical VMEM
        block_budget = 16 * _MIB
        vmem_cap = 96 * _MIB
    else:                            # v7x: 64 MiB physical, leave headroom
        block_budget = 8 * _MIB
        vmem_cap = 48 * _MIB
    if vmem_block_budget_bytes is not None:
        block_budget = int(vmem_block_budget_bytes)
    return block_budget, vmem_cap


def label_smoothing_cross_entropy(x, target, smoothing=0.1, block_rows=None,
                                  vmem_block_budget_bytes=None):
    """x: (N, C) float logits (bf16/f32 as stored, no pre-cast needed);
    target: (N,) integer labels. Returns scalar f32 loss."""
    n, c = x.shape
    itemsize = jnp.dtype(x.dtype).itemsize

    # Sublane packing of the input dtype: 8 for f32, 16 for bf16, 32 for int8.
    sublane = max(8, 32 // max(1, itemsize))

    block_budget, vmem_cap = _vmem_budgets(vmem_block_budget_bytes)

    # Pick a row-tile: biggest sublane-multiple whose (TM, C) block fits budget.
    if block_rows is None:
        tm = block_budget // max(1, c * itemsize)
        tm = max(sublane, min(1024, (tm // sublane) * sublane))
        tm = min(tm, _round_up(n, sublane))
        # Guarantee >= 2 grid steps so both v7x TensorCores get work.
        if n > sublane and tm >= n:
            tm = _round_up(pl.cdiv(n, 2), sublane)
    else:
        tm = max(sublane, _round_up(block_rows, sublane))
        tm = min(tm, _round_up(n, sublane))
    grid_n = pl.cdiv(n, tm)

    x_block_bytes = tm * c * itemsize
    # Double-buffered x blocks + f32 compute temps + small target/output bufs;
    # explicit limit so behaviour is predictable on v5e / v6e / v7x alike.
    vmem_limit = int(min(vmem_cap, max(32 * _MIB, 6 * x_block_bytes)))

    tgt2d = target.astype(jnp.int32).reshape(n, 1)

    kernel = functools.partial(
        _ls_ce_kernel,
        smoothing=float(smoothing),
        n_rows=n,
        num_classes=c,
        block_rows=tm,
    )

    partials = pl.pallas_call(
        kernel,
        out_shape=jax.ShapeDtypeStruct((grid_n, 1, 128), jnp.float32),
        grid_spec=pltpu.PrefetchScalarGridSpec(
            num_scalar_prefetch=0,
            grid=(grid_n,),
            in_specs=[
                pl.BlockSpec((tm, c), lambda i: (i, 0)),   # logits row-block
                pl.BlockSpec((tm, 1), lambda i: (i, 0)),   # targets row-block
            ],
            out_specs=pl.BlockSpec((1, 1, 128), lambda i: (i, 0, 0)),
        ),
        compiler_params=pltpu.CompilerParams(
            dimension_semantics=("parallel",),  # independent row blocks
            vmem_limit_bytes=vmem_limit,
        ),
    )(x, tgt2d)

    # Reduce per-block partial sums in JAX; divide by the true N.
    return jnp.sum(partials[:, 0, 0]) / n


def _reference(x, target, smoothing=0.1):
    confidence = 1.0 - smoothing
    logprobs = jax.nn.log_softmax(x.astype(jnp.float32), axis=-1)
    nll = -jnp.take_along_axis(logprobs, target[:, None].astype(jnp.int32),
                               axis=-1)[:, 0]
    smooth = -jnp.mean(logprobs, axis=-1)
    return jnp.mean(confidence * nll + smoothing * smooth)


if __name__ == "__main__":
    key = jax.random.PRNGKey(0)
    kx, kt = jax.random.split(key)

    # Small shapes: batch N=28 (not a multiple of the row tile -> exercises edge
    # masking), C=40 classes.
    N, C = 28, 40
    x = jax.random.normal(kx, (N, C), dtype=jnp.float32)
    target = jax.random.randint(kt, (N,), 0, C, dtype=jnp.int32)

    # 1) Explicit small tile -> multi-block grid, f32 path.
    loss = label_smoothing_cross_entropy(x, target, smoothing=0.1, block_rows=8)
    loss = jax.block_until_ready(loss)
    ref = _reference(x, target, smoothing=0.1)
    assert jnp.allclose(loss, ref, atol=1e-5, rtol=1e-5), (loss, ref)

    # 2) Auto-sized tile (exercises generation-aware budgets and the >=2-block
    #    split), bf16 logits path.
    x_bf16 = x.astype(jnp.bfloat16)
    loss_bf = label_smoothing_cross_entropy(x_bf16, target, smoothing=0.1)
    loss_bf = jax.block_until_ready(loss_bf)
    ref_bf = _reference(x_bf16, target, smoothing=0.1)
    assert jnp.allclose(loss_bf, ref_bf, atol=1e-4, rtol=1e-4), (loss_bf, ref_bf)

    print("KERNEL_OK")
</pallas_src>

<mosaic_0001>
module attributes {stable_mosaic.version = 11 : i64} {
  func.func @_ls_ce_kernel(%arg0: i32, %arg1: memref<8x40xf32, #tpu.memory_space<vmem>>, %arg2: memref<8x1xi32, #tpu.memory_space<vmem>>, %arg3: memref<1x1x128xf32, #tpu.memory_space<vmem>>) attributes {dimension_semantics = [#tpu.dimension_semantics<parallel>], iteration_bounds = array<i64: 4>, scalar_prefetch = 0 : i64, scratch_operands = 0 : i64, tpu.core_type = #tpu.core_type<tc>, window_params = [{transform_indices = @transform_0, window_bounds = array<i64: 8, 40>}, {transform_indices = @transform_1, window_bounds = array<i64: 8, 1>}, {transform_indices = @transform_2, window_bounds = array<i64: 1, 1, 128>}]} {
    %c0 = arith.constant 0 : index
    %c0_0 = arith.constant 0 : index
    %0 = vector.load %arg1[%c0, %c0_0] : memref<8x40xf32, #tpu.memory_space<vmem>>, vector<8x40xf32>
    %cst = arith.constant dense<0xFF800000> : vector<8xf32>
    %1 = vector.multi_reduction <maximumf>, %0, %cst [1] : vector<8x40xf32> to vector<8xf32>
    %2 = vector.shape_cast %1 : vector<8xf32> to vector<8x1xf32>
    %3 = vector.broadcast %2 : vector<8x1xf32> to vector<8x40xf32>
    %4 = arith.subf %0, %3 : vector<8x40xf32>
    %5 = math.exp %4 : vector<8x40xf32>
    %cst_1 = arith.constant dense<0.000000e+00> : vector<8xf32>
    %6 = vector.multi_reduction <add>, %5, %cst_1 [1] : vector<8x40xf32> to vector<8xf32>
    %7 = vector.shape_cast %6 : vector<8xf32> to vector<8x1xf32>
    %8 = math.log %7 : vector<8x1xf32>
    %c0_2 = arith.constant 0 : index
    %c0_3 = arith.constant 0 : index
    %9 = vector.load %arg2[%c0_2, %c0_3] : memref<8x1xi32, #tpu.memory_space<vmem>>, vector<8x1xi32>
    %10 = tpu.iota {dimensions = array<i32: 1>} : vector<1x40xi32>
    %11 = vector.broadcast %10 : vector<1x40xi32> to vector<8x40xi32>
    %12 = vector.broadcast %9 : vector<8x1xi32> to vector<8x40xi32>
    %13 = arith.cmpi eq, %11, %12 : vector<8x40xi32>
    %cst_4 = arith.constant dense<0.000000e+00> : vector<8xf32>
    %14 = vector.multi_reduction <add>, %4, %cst_4 [1] : vector<8x40xf32> to vector<8xf32>
    %15 = vector.shape_cast %14 : vector<8xf32> to vector<8x1xf32>
    %cst_5 = arith.constant 0.000000e+00 : f32
    %16 = vector.broadcast %cst_5 : f32 to vector<8x40xf32>
    %17 = arith.select %13, %4, %16 : vector<8x40xi1>, vector<8x40xf32>
    %cst_6 = arith.constant dense<0.000000e+00> : vector<8xf32>
    %18 = vector.multi_reduction <add>, %17, %cst_6 [1] : vector<8x40xf32> to vector<8xf32>
    %19 = vector.shape_cast %18 : vector<8xf32> to vector<8x1xf32>
    %cst_7 = arith.constant 2.500000e-03 : f32
    %20 = vector.broadcast %cst_7 : f32 to vector<8x1xf32>
    %21 = arith.mulf %20, %15 : vector<8x1xf32>
    %cst_8 = arith.constant 0.899999976 : f32
    %22 = vector.broadcast %cst_8 : f32 to vector<8x1xf32>
    %23 = arith.mulf %22, %19 : vector<8x1xf32>
    %24 = arith.addf %21, %23 : vector<8x1xf32>
    %25 = arith.subf %8, %24 : vector<8x1xf32>
    %c8_i32 = arith.constant 8 : i32
    %26 = arith.muli %arg0, %c8_i32 : i32
    %27 = tpu.iota {dimensions = array<i32: 0>} : vector<8x1xi32>
    %28 = vector.broadcast %26 : i32 to vector<8x1xi32>
    %29 = arith.addi %28, %27 : vector<8x1xi32>
    %c28_i32 = arith.constant 28 : i32
    %30 = vector.broadcast %c28_i32 : i32 to vector<8x1xi32>
    %31 = arith.cmpi slt, %29, %30 : vector<8x1xi32>
    %cst_9 = arith.constant 0.000000e+00 : f32
    %32 = vector.broadcast %cst_9 : f32 to vector<8x1xf32>
    %33 = arith.select %31, %25, %32 : vector<8x1xi1>, vector<8x1xf32>
    %34 = vector.shape_cast %33 : vector<8x1xf32> to vector<1x8x1xf32>
    %cst_10 = arith.constant dense<0.000000e+00> : vector<1xf32>
    %35 = vector.multi_reduction <add>, %34, %cst_10 [1, 2] : vector<1x8x1xf32> to vector<1xf32>
    %36 = vector.shape_cast %35 : vector<1xf32> to vector<1x1x1xf32>
    %37 = vector.extract %36[0, 0, 0] : f32 from vector<1x1x1xf32>
    %38 = vector.broadcast %37 : f32 to vector<1x1x128xf32>
    %c0_11 = arith.constant 0 : index
    %c0_12 = arith.constant 0 : index
    %c0_13 = arith.constant 0 : index
    %39 = vector.load %arg3[%c0_11, %c0_12, %c0_13] : memref<1x1x128xf32, #tpu.memory_space<vmem>>, vector<1x1x128xf32>
    tpu.vector_store %arg3[%c0_11, %c0_12, %c0_13], %38 {strides = array<i32>} : memref<1x1x128xf32, #tpu.memory_space<vmem>>, vector<1x1x128xf32>,
    return
  }
  func.func @transform_0(%arg0: i32) -> (i32, i32) {
    %c0_i32 = arith.constant 0 : i32
    %c0_i32_0 = arith.constant 0 : i32
    return %arg0, %c0_i32 : i32, i32
  }
  func.func @transform_1(%arg0: i32) -> (i32, i32) {
    %c0_i32 = arith.constant 0 : i32
    %c0_i32_0 = arith.constant 0 : i32
    return %arg0, %c0_i32 : i32, i32
  }
  func.func @transform_2(%arg0: i32) -> (i32, i32, i32) {
    %c0_i32 = arith.constant 0 : i32
    %c0_i32_0 = arith.constant 0 : i32
    %c0_i32_1 = arith.constant 0 : i32
    return %arg0, %c0_i32, %c0_i32_0 : i32, i32, i32
  }
}

</mosaic_0001>

<bundles_post_ra>
// kernel: tpu_custom_call.1
= control target key start
LH: loop header
LB: loop body
LE: loop exit
PB: predicated region body
PF: predicated region fallthrough
CT: control target
= control target key end

     0   :  { %7 = vsyncpa [#allocation3], 0  ;;  %s532_s0 = inlined_call_operand.vmem [shape: f32[28,40], index: 0, kind: input, shape index: {}]   ;;  %s533_s1 = inlined_call_operand.vmem [shape: s32[28,1], index: 1, kind: input, shape index: {}]   ;;  %s534_s2 = inlined_call_operand.hbm [shape: f32[4,1,128], index: 2, kind: output, shape index: {}]  }
   0x1   :  { %9 = vsyncpa [#allocation3 + $0x1], 0  ;;  %s424_s9 = smov 0   ;;  %s426_s10 = smov 0  }
   0x2   :  { %s428_s11 = smov 0   ;;  %s430_s12 = smov 0  }
   0x3 LB: > { %s445_s13 = sadd.s32 4294967295, %s405_s12   ;;  %s286_s14 = sadd.s32 4294967294, %s405_s12   ;;  %s405_s12 = sphi %s430_s12, %s540_s12   ;;  %s401_s11 = sphi %s428_s11, %s539_s11   ;;  %s397_s10 = sphi %s426_s10, %s538_s10   ;;  %s393_s9 = sphi %s424_s9, %s537_s9  }
   0x4   : > { %s449_s15 = sadd.s32 1, %s405_s12   ;;  %s74_s16 = sadd.s32 1, %s401_s11 }
   0x5   : > { %s71_s17 = ssub.s32 %s405_s12, %s449_s15  ;;  %p84_p0 = scmp.ne.s32.totalorder %s401_s11, %s397_s10 }
   0x6   : > { %p72_p1 = scmp.eq.s32.totalorder %s71_s17, 0  ;;  %p85_p2 = scmp.eq.s32.totalorder %s445_s13, 3 }
   0x7   : > { %p90_p3 = scmp.ne.s32.totalorder %s397_s10, %s393_s9  ;;  %p91_p4 = scmp.eq.s32.totalorder %s286_s14, 3 }
   0x8   : > { %s460_s18 = scalar_select %p72_p1, %s401_s11, %s74_s16  }
   0x9   : > { %p462_p5 = por %p85_p2, %p84_p0  ;;  %p466_p6 = por %p91_p4, %p90_p3 }
   0xa   : > { %p289_p7 = scmp.ge.s32.totalorder %s405_s12, 1  ;;  %p123_p8 = scmp.lt.s32.totalorder %s405_s12, 5 }
   0xc   : > { %p124_p9 = pnand %p289_p7, %p123_p8 }
   0xd   : > { %p147_p10 = scmp.lt.s32.totalorder (!%p124_p9), %s445_s13, 3  ;;  %v407_v0 = vmov (!%p124_p9), 0   ;;  %vm156_vm0 = vcmask (!%p124_p9), 326656   ;;  %v169_v7 = vlaneseq (!%p124_p9)  ;;  %s292_s29 = sshll.u32 (!%p124_p9), %s445_s13, 3  ;;  %vm193_vm3 = vcmask (!%p124_p9), 7168  }
   0xe   : > { %127 = sbr.rel (%p124_p9) target bundleno = 563 (0x233), region = 28  ;;  %338 = vset.pattern.permute.xlu0 (!%p124_p9), %v407_v0  ;;  %v189_v18 = vstv (!%p124_p9), %s292_s29  ;;  %s145_s30 = sand.u32 (!%p124_p9), 1, %s397_s10  }
   0xf   : > { %v170_v8 = vand.u32 (!%p124_p9), 127, %v169_v7  ;;  %v188_v17 = vshrl.u32 (!%p124_p9), %v169_v7, 7  ;;  %s146_s3 = scalar_lea.vmem (!%p124_p9), [#allocation2], %s145_s30  ;;  %s293_s5 = sshll.u32 (!%p124_p9), %s445_s13, 4 }
  0x10   : > { %s219_s4 = sshll.u32 (!%p124_p9), %s146_s3, 4  ;;  %s492_s14 = scalar_lea.hbm (!%p124_p9), %s534_s2, %s293_s5  ;;  %s487_s4 = int_to_ptr.vmem [resolvable:$true] %s219_s4 }
  0x11   : > { %v190_v22 = vadd.s32 (!%p124_p9), %v189_v18, %v188_v17  ;;  %s207_s16 = scalar_lea.sflag (!%p124_p9), [#allocation3], %s145_s30  ;;  %s343_s17 = scalar_lea.vmem (!%p124_p9), %s487_s4, 16 }
  0x12   : > { %p344_p11 = scmp.ne.s32.totalorder (!%p124_p9), %s487_s4, %s343_s17 }
  0x13   : > { %vm191_vm2 = vcmp.lt.s32.totalorder (!%p124_p9), %v190_v22, 28 }
  0x14   : > { %p345_p12 = pnand (!%p124_p9), %p344_p11, %p462_p5 }
  0x15   : > { %s148_s21 = scalar_select %p147_p10, %s445_s13, 3 }
  0x16   : > { %p346_p13 = pneg %p345_p12  ;;  %s408_s13 = smov [#allocation2]  }
  0x17   : > { %s290_s22 = sshll.u32 %s148_s21, 3  ;;  %s347_s21 = sshll.u32 %s408_s13, 4  ;;  %s348_s21 = int_to_ptr.vmem [resolvable:$false] %s347_s21 }
  0x18   : > { %s150_s25 = scalar_lea.vmem %s532_s0, %s290_s22  ;;  %s154_s28 = scalar_lea.vmem %s533_s1, %s290_s22 }
  0x19   : > { %v155_v1 = vld [vmem:[%s150_s25] sm:$0xff]  ;;  %s349_s22 = scalar_lea.vmem %s348_s21, 32  ;;  %p350_p0 = scmp.lt.s32.totalorder %s487_s4, %s348_s21 }
  0x1a   : > { %v157_v2 = vsel %vm156_vm0, %v155_v1, -inf  ;;  %v168_v3 = vld [vmem:[%s154_s28] sm:$0xff]  ;;  %p351_p1 = scmp.lt.s32.totalorder %s349_s22, %s343_s17 }
  0x1b   : > { %158 = vmax.xlane.f32.xlu0 %v157_v2 }
  0x1c   : > { %p352_p2 = por %p351_p1, %p350_p0 }
  0x1e   : > { %p353_p3 = pnand %p352_p2, %p346_p13 }
  0x31   : > { %172 = vperm.xlu0 %338, %v168_v3  }
  0xa8   : > { %v159_v4 = vpop.xlane.xlu0 %158 }
  0xa9   : > { %v160_v5 = vsub.f32 %v155_v1, %v159_v4 }
  0xab   : > { %v161_v6 = vmul.f32 1.442695, %v160_v5  ;;  %v175_v12 = vsel %vm156_vm0, %v160_v5, 0.0 }
  0xad   : > { %339 = vpow2.f32 %v161_v6 }
  0xb0   : > { %v173_v10 = vpop.permute.xlu0 %172 }
  0xb1   : > { %vm174_vm1 = vcmp.eq.s32.totalorder %v170_v8, %v173_v10 }
  0xb2   : > { %v178_v13 = vsel %vm174_vm1, %v160_v5, 0.0 }
  0xb3   : > { %v179_v14 = vsel %vm156_vm0, %v178_v13, 0.0 }
  0xb7   : > { %v340_v9 = vpop.eup %339 }
  0xb8   : > { %v163_v11 = vsel %vm156_vm0, %v340_v9, 0.0 }
  0xb9   : > { %164 = vadd.xlane.f32.xlu1 %v163_v11 }
  0xbd   : > { %176 = vadd.xlane.f32.xlu1 %v175_v12 }
  0xc1   : > { %180 = vadd.xlane.f32.xlu1 %v179_v14 }
 0x146   : > { %v165_v15 = vpop.xlane.xlu1 %164 }
 0x147   : > { %341 = vlog2.f32 %v165_v15 }
 0x14a   : > { %v177_v16 = vpop.xlane.xlu1 %176 }
 0x14b   : > { %v182_v20 = vmul.f32 0.0025, %v177_v16 }
 0x14e   : > { %v181_v19 = vpop.xlane.xlu1 %180 }
 0x14f   : > { %v183_v21 = vmul.f32 0.9, %v181_v19 }
 0x151   : > { %v342_v23 = vpop.eup %341  ;;  %v184_v24 = vadd.f32 %v183_v21, %v182_v20 }
 0x152   : > { %v167_v25 = vmul.f32 0.6931472, %v342_v23 }
 0x154   : > { %v185_v26 = vsub.f32 %v167_v25, %v184_v24 }
 0x156   : > { %v192_v27 = vsel %vm191_vm2, %v185_v26, 0.0 }
 0x157   : > { %v194_v28 = vsel %vm193_vm3, %v192_v27, 0.0 }
 0x158   : > { %195 = vadd.xlane.f32.xlu1 %v194_v28 }
 0x1e5   : > { %v196_v29 = vpop.xlane.xlu1 %195 }
 0x1e6   : > { %v197_v30 = vrot.slane %v196_v29, 4 }
 0x1e8   : > { %v198_v31 = vadd.f32 %v197_v30, %v196_v29 }
 0x1ea   : > { %v199_v32 = vrot.slane %v198_v31, 2 }
 0x1ec   : > { %v200_v33 = vadd.f32 %v199_v32, %v198_v31 }
 0x1ee   : > { %v201_v34 = vrot.slane %v200_v33, 1 }
 0x1f0   : > { %v202_v35 = vadd.f32 %v201_v34, %v200_v33 }
 0x1f2   : > { %296 = vpush %v202_v35 }
 0x223   : > { %s297_s6 = spop %296 }
 0x224   : > { %v204_v36 = vstv %s297_s6 }
 0x225   : > { %205 = vst [vmem:[%s146_s3] sm:$0x1] %v204_v36 }
 0x226   : > { %356 = shalt.err (!%p353_p3)
}
 0x227   : > { %s357_s23 = scalar_lea.hbm %s492_s14, 16  ;;  %s361_s26 = scalar_lea.hbm %s534_s2, 64 }
 0x228   : > { %p358_p4 = scmp.ne.s32.totalorder %s492_s14, %s357_s23  ;;  %p362_p9 = scmp.lt.u32.totalorder %s492_s14, %s534_s2 }
 0x229   : > { %p363_p10 = scmp.lt.u32.totalorder %s361_s26, %s357_s23  ;;  %p365_p12 = scmp.lt.u32.totalorder %s357_s23, %s492_s14 }
 0x22a   : > { %p359_p7 = pnand %p358_p4, %p462_p5 }
 0x22b   : > { %p364_p11 = por %p363_p10, %p362_p9 }
 0x22c   : > { %p360_p8 = pneg %p359_p7 }
 0x22d   : > { %p366_p13 = por %p365_p12, %p364_p11 }
 0x22f   : > { %p367_p0 = pnand %p366_p13, %p360_p8 }
 0x231   : > { %370 = shalt.err (!%p367_p0)
}
 0x232   : > { %298 = dma.vmem_to_hbm [thread:$0]  (%p462_p5), %s487_s4, 16, %s492_s14, %s207_s16  }
 0x233 PF: > { %p304_p1 = scmp.ge.s32.totalorder %s405_s12, 2  ;;  %s231_s29 = sand.u32 1, %s393_s9  }
 0x234   : > { %s232_s30 = scalar_lea.sflag [#allocation3], %s231_s29 }
 0x235   : > { %p301_p2 = pnand %p304_p1, %p466_p6 }
 0x237   : > { %388 = dma.done.wait (!%p301_p2), %s232_s30, 16  }
 0x238   : > { %390 = vsyncadd (!%p301_p2), %s232_s30, 4294967280  ;;  %p12_p3 = scmp.ge.s32.totalorder %s449_s15, 6   ;;  %s537_s9 = smov %s397_s10 }
 0x239   : > { %s538_s10 = smov %s401_s11  ;;  %s539_s11 = smov %s460_s18 }
 0x23a   : > { %s540_s12 = smov %s449_s15  ;;  %14 = sbr.rel (!%p12_p3) target bundleno = 3 (0x3), region = 66 }
 0x241   :  { %236 = vsyncpa [#allocation3], 1 }
 0x242   :  { %238 = vsyncpa [#allocation3 + $0x1], 1 }

</bundles_post_ra>
